<compile_context>
chip_gen: v5e
topology: v5e:2x2
jax: 0.10.0
libtpu: 0.0.40
codegen_flags: <defaults>
</compile_context>

<pallas_src>
import math

import jax
import jax.numpy as jnp
from jax.experimental import pallas as pl
from jax.experimental.pallas import tpu as pltpu


def _round_up(x, m):
    return ((x + m - 1) // m) * m


def _choose_tm(M, per_row_bytes, fixed_bytes, budget_bytes=40 << 20, tm_cap=2048):
    """M-tile: as large as the VMEM budget allows, a multiple of 8, and at least
    2 grid steps over M when M > 8 (so both v7x TensorCores get work)."""
    if M <= 8:
        return int(M)
    avail = max(budget_bytes - fixed_bytes, 2 << 20)
    tm = max(avail // max(per_row_bytes, 1), 8)
    tm = min(tm, tm_cap, _round_up(pl.cdiv(M, 2), 8))
    return int(max(8, (tm // 8) * 8))


def _vmem_limit(need_bytes):
    # Explicit scoped-VMEM limit: cover the real buffer sum (+ margin), never
    # below the 32 MiB default, capped well under physical VMEM.
    return int(min(max(need_bytes + (8 << 20), 32 << 20), 100 << 20))


def prepare_triu_operands(w, b, k_pad, n_pad, in_dtype):
    """tril + transpose + pad + cast.  Hoist/cache this outside the hot loop
    when the weights are static (inference) or once per training step."""
    T = w.shape[0]
    w_eff = jnp.tril(w.astype(jnp.float32)).T          # (T, T), upper-triangular
    b_f32 = b.astype(jnp.float32)
    if (k_pad, n_pad) != (T, T):
        w_eff = jnp.pad(w_eff, ((0, k_pad - T), (0, n_pad - T)))
        b_f32 = jnp.pad(b_f32, (0, n_pad - T))
    return w_eff.astype(in_dtype), b_f32.reshape(1, n_pad)


# ----------------------------- kernels ---------------------------------------


def _triu_kernel_simple(x_ref, w_ref, b_ref, o_ref):
    # x:(tm,T) @ w:(T,T_out) on the MXU with f32 accumulation; bias add on VPU.
    acc = jnp.dot(x_ref[...], w_ref[...], preferred_element_type=jnp.float32)
    o_ref[...] = (acc + b_ref[...]).astype(o_ref.dtype)


def _triu_kernel_tiled(x_ref, w_ref, b_ref, o_ref, acc_ref):
    # Grid (m, n, k), k innermost / "arbitrary".  Only k <= n contributes
    # because w_eff = tril(W).T is upper-triangular (block-wise).
    n = pl.program_id(1)
    k = pl.program_id(2)

    @pl.when(k == 0)
    def _():
        acc_ref[...] = jnp.zeros_like(acc_ref)

    @pl.when(k <= n)
    def _():
        acc_ref[...] += jnp.dot(x_ref[...], w_ref[...],
                                preferred_element_type=jnp.float32)

    @pl.when(k == n)  # last contributing k-block for this output block
    def _():
        o_ref[...] = (acc_ref[...] + b_ref[...]).astype(o_ref.dtype)


# ----------------------------- wrappers ---------------------------------------


def _triu_simple(x2, w, b, B, C, T, M, in_dtype, out_dtype, xb, ob):
    # Lane-dense output padding only when T >= 128; for tiny T the padded
    # writeback (+ slice pass) costs more than masked stores hidden under DMA.
    T_out = _round_up(T, 128) if T >= 128 else T
    w_eff, b2 = prepare_triu_operands(w, b, T, T_out, in_dtype)
    x_k = x2.astype(in_dtype)

    per_row = T * xb * 2 + T_out * ob * 2            # x + out, double-buffered
    fixed = T * T_out * xb * 2 + T_out * 4 * 2       # W + bias (worst case: dbl-buf)
    tm = _choose_tm(M, per_row, fixed)
    grid = (pl.cdiv(M, tm),)
    vmem_limit = _vmem_limit(fixed + tm * per_row)

    cost = pl.CostEstimate(
        flops=int(2 * M * T * T_out),
        bytes_accessed=int(xb * (M * T + T * T_out) + 4 * T_out + ob * M * T_out),
        transcendentals=0,
    )

    def call(single_buffer_invariants):
        inv_kw = {}
        if single_buffer_invariants and hasattr(pl, "Buffered"):
            inv_kw = dict(pipeline_mode=pl.Buffered(1))   # invariant: fetch once
        return pl.pallas_call(
            _triu_kernel_simple,
            out_shape=jax.ShapeDtypeStruct((M, T_out), out_dtype),
            grid=grid,
            in_specs=[
                pl.BlockSpec((tm, T), lambda i: (i, 0)),               # x (streamed)
                pl.BlockSpec((T, T_out), lambda i: (0, 0), **inv_kw),  # W (resident)
                pl.BlockSpec((1, T_out), lambda i: (0, 0), **inv_kw),  # bias
            ],
            out_specs=pl.BlockSpec((tm, T_out), lambda i: (i, 0)),
            compiler_params=pltpu.CompilerParams(
                dimension_semantics=("parallel",),
                vmem_limit_bytes=vmem_limit,
            ),
            cost_estimate=cost,
        )(x_k, w_eff, b2)

    try:
        out2 = call(True)
    except Exception:
        # pipeline_mode=Buffered(1) unsupported on this jax version: fall back
        # to default double-buffering of the invariant operands.
        out2 = call(False)

    if T_out != T:
        out2 = out2[:, :T]
    return out2.reshape(B, C, T)


def _triu_tiled(x2, w, b, B, C, T, M, in_dtype, out_dtype, xb, ob, tn=256):
    # 3-D (m, n, k) tiling for large T with triangular block skipping.
    tk = tn
    T_pad = _round_up(T, tn)
    nblk = T_pad // tn
    w_eff, b2 = prepare_triu_operands(w, b, T_pad, T_pad, in_dtype)
    x_k = x2
    if T_pad != T:
        x_k = jnp.pad(x_k, ((0, 0), (0, T_pad - T)))
    x_k = x_k.astype(in_dtype)

    per_row = tk * xb * 2 + tn * ob * 2 + tn * 4      # x dbuf + out dbuf + f32 acc
    fixed = tk * tn * xb * 2 + tn * 4 * 2             # W tile dbuf + bias dbuf
    tm = _choose_tm(M, per_row, fixed)
    grid = (pl.cdiv(M, tm), nblk, nblk)
    vmem_limit = _vmem_limit(fixed + tm * per_row)

    # Roughly half the (n, k) blocks contribute (triangular skip).
    cost = pl.CostEstimate(
        flops=int(2 * M * T_pad * T_pad * (nblk + 1) / (2 * nblk)),
        bytes_accessed=int(xb * (M * T_pad * (nblk + 1) / 2 + T_pad * T_pad / 2)
                           + 4 * T_pad + ob * M * T_pad),
        transcendentals=0,
    )

    out2 = pl.pallas_call(
        _triu_kernel_tiled,
        out_shape=jax.ShapeDtypeStruct((M, T_pad), out_dtype),
        grid=grid,
        in_specs=[
            # Clamp k to n: blocks strictly above the block diagonal are never
            # fetched (they contribute nothing since w_eff is upper-triangular).
            pl.BlockSpec((tm, tk), lambda m, n, k: (m, jnp.minimum(k, n))),
            pl.BlockSpec((tk, tn), lambda m, n, k: (jnp.minimum(k, n), n)),
            pl.BlockSpec((1, tn), lambda m, n, k: (0, n)),
        ],
        out_specs=pl.BlockSpec((tm, tn), lambda m, n, k: (m, n)),
        scratch_shapes=[pltpu.VMEM((tm, tn), jnp.float32)],
        compiler_params=pltpu.CompilerParams(
            dimension_semantics=("parallel", "parallel", "arbitrary"),
            vmem_limit_bytes=vmem_limit,
        ),
        cost_estimate=cost,
    )(x_k, w_eff, b2)

    if T_pad != T:
        out2 = out2[:, :T]
    return out2.reshape(B, C, T)


def triu_forward(x, w, b, *, use_bf16=True, tiled_t_threshold=1024):
    """x: [B, C, T]; w: [T, T] (row i = Linear(i+1,1) weights); b: [T]."""
    B, C, T = x.shape
    assert w.shape == (T, T) and b.shape == (T,)
    M = B * C
    out_dtype = x.dtype
    in_dtype = jnp.bfloat16 if use_bf16 else x.dtype
    xb = jnp.dtype(in_dtype).itemsize
    ob = jnp.dtype(out_dtype).itemsize
    x2 = x.reshape(M, T)

    if T >= tiled_t_threshold:
        return _triu_tiled(x2, w, b, B, C, T, M, in_dtype, out_dtype, xb, ob)
    return _triu_simple(x2, w, b, B, C, T, M, in_dtype, out_dtype, xb, ob)


# ----------------------------- references / params ---------------------------


def make_params(key, time_step):
    """Deterministic init mimicking nn.Linear(i+1, 1): U(-1/sqrt(fan_in), +1/sqrt(fan_in))."""
    w = jnp.zeros((time_step, time_step), jnp.float32)
    b = jnp.zeros((time_step,), jnp.float32)
    for i in range(time_step):
        key, kw, kb = jax.random.split(key, 3)
        bound = 1.0 / math.sqrt(i + 1)
        w = w.at[i, : i + 1].set(
            jax.random.uniform(kw, (i + 1,), jnp.float32, -bound, bound))
        b = b.at[i].set(jax.random.uniform(kb, (), jnp.float32, -bound, bound))
    return w, b


def triu_reference_loop(x, w, b):
    """Pure-JAX reference mirroring the PyTorch loop exactly."""
    T = w.shape[0]
    outs = []
    for i in range(T):
        yi = jnp.einsum("bct,t->bc", x[:, :, : i + 1], w[i, : i + 1]) + b[i]
        outs.append(yi[..., None])
    return jnp.concatenate(outs, axis=-1)


def triu_reference_dense(x, w, b, dtype=jnp.float32):
    """Vectorized reference: out = x @ tril(W).T + b, with operands optionally
    cast to `dtype` to match the kernel's bf16 MXU feed (f32 accumulation)."""
    B, C, T = x.shape
    w_eff = jnp.tril(w.astype(jnp.float32)).T.astype(dtype)
    x2 = x.reshape(B * C, T).astype(dtype)
    out = jnp.dot(x2, w_eff, preferred_element_type=jnp.float32) + b.astype(jnp.float32)
    return out.reshape(B, C, T).astype(x.dtype)


if __name__ == "__main__":
    # --- Small shape matching the module spec: B=2, C=4, time_step=8 ----------
    B, C, T = 2, 4, 8
    key = jax.random.PRNGKey(0)
    key, kx = jax.random.split(key)
    x = jax.random.normal(kx, (B, C, T), jnp.float32)
    w, b = make_params(key, T)

    ref = triu_reference_loop(x, w, b)

    out_f32 = jax.block_until_ready(triu_forward(x, w, b, use_bf16=False))
    assert out_f32.shape == (B, C, T)
    # Loose-ish tolerance covers possible reduced-precision f32 MXU paths.
    assert jnp.allclose(out_f32, ref, atol=5e-2, rtol=5e-2), "f32 kernel mismatch"

    out_bf16 = jax.block_until_ready(triu_forward(x, w, b, use_bf16=True))
    ref_bf16 = triu_reference_dense(x, w, b, dtype=jnp.bfloat16)
    assert jnp.allclose(out_bf16, ref_bf16, atol=1e-2, rtol=1e-2), "bf16 kernel mismatch"

    # --- Larger T: exercises the 3-D tiled path with triangular block skipping
    T2 = 1024
    key, kx2, kw2, kb2 = jax.random.split(key, 4)
    x_big = jax.random.normal(kx2, (B, C, T2), jnp.float32)
    w_big = jax.random.normal(kw2, (T2, T2), jnp.float32) / math.sqrt(T2)
    b_big = jax.random.normal(kb2, (T2,), jnp.float32)

    out_big = jax.block_until_ready(triu_forward(x_big, w_big, b_big, use_bf16=True))
    ref_big = triu_reference_dense(x_big, w_big, b_big, dtype=jnp.bfloat16)
    assert out_big.shape == (B, C, T2)
    assert jnp.allclose(out_big, ref_big, atol=1e-2, rtol=1e-2), "tiled kernel mismatch"

    print("KERNEL_OK")
</pallas_src>

<mosaic_0001>
module attributes {stable_mosaic.version = 11 : i64} {
  func.func @_triu_kernel_simple(%arg0: i32, %arg1: memref<8x8xf32, #tpu.memory_space<vmem>>, %arg2: memref<8x8xf32, #tpu.memory_space<vmem>>, %arg3: memref<1x8xf32, #tpu.memory_space<vmem>>, %arg4: memref<8x8xf32, #tpu.memory_space<vmem>>) attributes {dimension_semantics = [#tpu.dimension_semantics<parallel>], iteration_bounds = array<i64: 1>, scalar_prefetch = 0 : i64, scratch_operands = 0 : i64, tpu.core_type = #tpu.core_type<tc>, window_params = [{transform_indices = @transform_0, window_bounds = array<i64: 8, 8>}, {pipeline_mode = #tpu.pipeline_mode<synchronous>, transform_indices = @transform_1, window_bounds = array<i64: 8, 8>}, {pipeline_mode = #tpu.pipeline_mode<synchronous>, transform_indices = @transform_2, window_bounds = array<i64: 1, 8>}, {transform_indices = @transform_3, window_bounds = array<i64: 8, 8>}]} {
    %c0 = arith.constant 0 : index
    %c0_0 = arith.constant 0 : index
    %0 = vector.load %arg1[%c0, %c0_0] : memref<8x8xf32, #tpu.memory_space<vmem>>, vector<8x8xf32>
    %c0_1 = arith.constant 0 : index
    %c0_2 = arith.constant 0 : index
    %1 = vector.load %arg2[%c0_1, %c0_2] : memref<8x8xf32, #tpu.memory_space<vmem>>, vector<8x8xf32>
    %cst = arith.constant dense<0.000000e+00> : vector<8x8xf32>
    %2 = tpu.matmul %0, %1, %cst {dimension_numbers = #tpu.dot_dimension_numbers<[1], [0], [0], [1], [0, 0, 1, 1], [], []>} : vector<8x8xf32>, vector<8x8xf32>, vector<8x8xf32> -> vector<8x8xf32>
    %c0_3 = arith.constant 0 : index
    %c0_4 = arith.constant 0 : index
    %3 = vector.load %arg3[%c0_3, %c0_4] : memref<1x8xf32, #tpu.memory_space<vmem>>, vector<1x8xf32>
    %4 = vector.broadcast %3 : vector<1x8xf32> to vector<8x8xf32>
    %5 = arith.addf %2, %4 : vector<8x8xf32>
    %c0_5 = arith.constant 0 : index
    %c0_6 = arith.constant 0 : index
    %6 = vector.load %arg4[%c0_5, %c0_6] : memref<8x8xf32, #tpu.memory_space<vmem>>, vector<8x8xf32>
    tpu.vector_store %arg4[%c0_5, %c0_6], %5 {strides = array<i32>} : memref<8x8xf32, #tpu.memory_space<vmem>>, vector<8x8xf32>,
    return
  }
  func.func @transform_0(%arg0: i32) -> (i32, i32) {
    %c0_i32 = arith.constant 0 : i32
    %c0_i32_0 = arith.constant 0 : i32
    return %arg0, %c0_i32 : i32, i32
  }
  func.func @transform_1(%arg0: i32) -> (i32, i32) {
    %c0_i32 = arith.constant 0 : i32
    %c0_i32_0 = arith.constant 0 : i32
    %c0_i32_1 = arith.constant 0 : i32
    return %c0_i32, %c0_i32_0 : i32, i32
  }
  func.func @transform_2(%arg0: i32) -> (i32, i32) {
    %c0_i32 = arith.constant 0 : i32
    %c0_i32_0 = arith.constant 0 : i32
    %c0_i32_1 = arith.constant 0 : i32
    return %c0_i32, %c0_i32_0 : i32, i32
  }
  func.func @transform_3(%arg0: i32) -> (i32, i32) {
    %c0_i32 = arith.constant 0 : i32
    %c0_i32_0 = arith.constant 0 : i32
    return %arg0, %c0_i32 : i32, i32
  }
}

module attributes {stable_mosaic.version = 11 : i64} {
  func.func @_triu_kernel_simple(%arg0: i32, %arg1: memref<8x8xf32, #tpu.memory_space<vmem>>, %arg2: memref<8x8xf32, #tpu.memory_space<vmem>>, %arg3: memref<1x8xf32, #tpu.memory_space<vmem>>, %arg4: memref<8x8xf32, #tpu.memory_space<vmem>>) attributes {dimension_semantics = [#tpu.dimension_semantics<parallel>], iteration_bounds = array<i64: 1>, scalar_prefetch = 0 : i64, scratch_operands = 0 : i64, tpu.core_type = #tpu.core_type<tc>, window_params = [{transform_indices = @transform_0, window_bounds = array<i64: 8, 8>}, {pipeline_mode = #tpu.pipeline_mode<synchronous>, transform_indices = @transform_1, window_bounds = array<i64: 8, 8>}, {pipeline_mode = #tpu.pipeline_mode<synchronous>, transform_indices = @transform_2, window_bounds = array<i64: 1, 8>}, {transform_indices = @transform_3, window_bounds = array<i64: 8, 8>}]} {
    %c0 = arith.constant 0 : index
    %c0_0 = arith.constant 0 : index
    %0 = vector.load %arg1[%c0, %c0_0] : memref<8x8xf32, #tpu.memory_space<vmem>>, vector<8x8xf32>
    %c0_1 = arith.constant 0 : index
    %c0_2 = arith.constant 0 : index
    %1 = vector.load %arg2[%c0_1, %c0_2] : memref<8x8xf32, #tpu.memory_space<vmem>>, vector<8x8xf32>
    %cst = arith.constant dense<0.000000e+00> : vector<8x8xf32>
    %2 = tpu.matmul %0, %1, %cst {dimension_numbers = #tpu.dot_dimension_numbers<[1], [0], [0], [1], [0, 0, 1, 1], [], []>} : vector<8x8xf32>, vector<8x8xf32>, vector<8x8xf32> -> vector<8x8xf32>
    %c0_3 = arith.constant 0 : index
    %c0_4 = arith.constant 0 : index
    %3 = vector.load %arg3[%c0_3, %c0_4] : memref<1x8xf32, #tpu.memory_space<vmem>>, vector<1x8xf32>
    %4 = vector.broadcast %3 : vector<1x8xf32> to vector<8x8xf32>
    %5 = arith.addf %2, %4 : vector<8x8xf32>
    %c0_5 = arith.constant 0 : index
    %c0_6 = arith.constant 0 : index
    %6 = vector.load %arg4[%c0_5, %c0_6] : memref<8x8xf32, #tpu.memory_space<vmem>>, vector<8x8xf32>
    tpu.vector_store %arg4[%c0_5, %c0_6], %5 {strides = array<i32>} : memref<8x8xf32, #tpu.memory_space<vmem>>, vector<8x8xf32>,
    return
  }
  func.func @transform_0(%arg0: i32) -> (i32, i32) {
    %c0_i32 = arith.constant 0 : i32
    %c0_i32_0 = arith.constant 0 : i32
    return %arg0, %c0_i32 : i32, i32
  }
  func.func @transform_1(%arg0: i32) -> (i32, i32) {
    %c0_i32 = arith.constant 0 : i32
    %c0_i32_0 = arith.constant 0 : i32
    %c0_i32_1 = arith.constant 0 : i32
    return %c0_i32, %c0_i32_0 : i32, i32
  }
  func.func @transform_2(%arg0: i32) -> (i32, i32) {
    %c0_i32 = arith.constant 0 : i32
    %c0_i32_0 = arith.constant 0 : i32
    %c0_i32_1 = arith.constant 0 : i32
    return %c0_i32, %c0_i32_0 : i32, i32
  }
  func.func @transform_3(%arg0: i32) -> (i32, i32) {
    %c0_i32 = arith.constant 0 : i32
    %c0_i32_0 = arith.constant 0 : i32
    return %arg0, %c0_i32 : i32, i32
  }
}

</mosaic_0001>

<bundles_post_ra>
// kernel: tpu_custom_call.1
= control target key start
LH: loop header
LB: loop body
LE: loop exit
PB: predicated region body
PF: predicated region fallthrough
CT: control target
= control target key end

     0   :  { %8 = vsyncpa [#allocation3], 0  ;;  %s210_s0 = inlined_call_operand.hbm [shape: f32[8,8], index: 0, kind: input, shape index: {}]   ;;  %s211_s1 = inlined_call_operand.hbm [shape: f32[8,8], index: 1, kind: input, shape index: {}]   ;;  %s212_s2 = inlined_call_operand.vmem [shape: f32[1,8], index: 2, kind: input, shape index: {}]   ;;  %s213_s3 = inlined_call_operand.hbm [shape: f32[8,8], index: 3, kind: output, shape index: {}]  }
   0x1   :  { %9 = vsyncpa [#allocation6], 0 }
   0x2   :  { %10 = vsyncpa [#allocation4], 0  ;;  %s16_s14 = sshll.u32 %s210_s0, 4  ;;  %s175_s15 = smov [#allocation2]   ;;  %s17_s14 = int_to_ptr.hbm [resolvable:$true] %s16_s14 }
   0x3   :  { %s18_s16 = sshll.u32 %s175_s15, 4  ;;  %s27_s19 = sshll.u32 %s211_s1, 4  ;;  %s19_s16 = int_to_ptr.vmem [resolvable:$true] %s18_s16  ;;  %s28_s19 = int_to_ptr.hbm [resolvable:$true] %s27_s19 }
   0x4   :  { %21 = dma.hbm_to_vmem [thread:$0]  %s17_s14, 128, %s19_s16, [#allocation3]  }
   0x5   :  { %s176_s20 = smov [#allocation5]  }
   0x6   :  { %s29_s21 = sshll.u32 %s176_s20, 4  ;;  %s30_s21 = int_to_ptr.vmem [resolvable:$true] %s29_s21 }
   0x7   :  { %32 = dma.hbm_to_vmem [thread:$0]  %s28_s19, 128, %s30_s21, [#allocation6]  }
   0x8   :  { %169 = dma.done.wait [#allocation3], 128  }
   0x9   :  { %170 = vsyncadd [#allocation3], 4294967168 }
   0xa   :  { %171 = dma.done.wait [#allocation6], 128  }
   0xb   :  { %172 = vsyncadd [#allocation6], 4294967168  ;;  %vm49_vm0 = vcmask 64512   ;;  %v44_v0 = vld [vmem:[#allocation5] sm:$0xff]  ;;  %v43_v1 = vld [vmem:[#allocation2] sm:$0xff]  ;;  %s177_s1 = smov [#allocation7]  }
   0xc   :  { %68 = vmatpush.msra.mxu0 %v44_v0  ;;  %v96_v2 = vld [vmem:[%s212_s2] ss:$0 sm:$0xff]  ;;  %s79_s23 = sshll.u32 %s177_s1, 4  ;;  %s81_s26 = sshll.u32 %s213_s3, 4  ;;  %s80_s23 = int_to_ptr.vmem [resolvable:$true] %s79_s23  ;;  %s82_s26 = int_to_ptr.hbm [resolvable:$true] %s81_s26 }
   0xd   :  { %92 = vmatmul.msk.f32.vlgmr.msra.gmra.mxu0 %vm49_vm0, %v43_v1 }
  0x8a   :  { %v70_v3 = vpop.f32.mrf.mxu0 }
  0x8b   :  { %v71_v4 = vadd.f32 %v96_v2, %v70_v3 }
  0x8d   :  { %73 = vst.msk [vmem:[#allocation7] sm:$0xff] %vm49_vm0, %v71_v4 }
  0x8e   :  { %84 = dma.vmem_to_hbm [thread:$0]  %s80_s23, 128, %s82_s26, [#allocation4]  }
  0x8f   :  { %173 = dma.done.wait [#allocation4], 128  }
  0x90   :  { %174 = vsyncadd [#allocation4], 4294967168 }
  0x91   :  { %89 = vsyncpa [#allocation3], 1 }
  0x92   :  { %90 = vsyncpa [#allocation6], 1 }
  0x93   :  { %91 = vsyncpa [#allocation4], 1 }

// kernel: tpu_custom_call.1
= control target key start
LH: loop header
LB: loop body
LE: loop exit
PB: predicated region body
PF: predicated region fallthrough
CT: control target
= control target key end

     0   :  { %8 = vsyncpa [#allocation3], 0  ;;  %s210_s0 = inlined_call_operand.hbm [shape: f32[8,8], index: 0, kind: input, shape index: {}]   ;;  %s211_s1 = inlined_call_operand.hbm [shape: f32[8,8], index: 1, kind: input, shape index: {}]   ;;  %s212_s2 = inlined_call_operand.vmem [shape: f32[1,8], index: 2, kind: input, shape index: {}]   ;;  %s213_s3 = inlined_call_operand.hbm [shape: f32[8,8], index: 3, kind: output, shape index: {}]  }
   0x1   :  { %9 = vsyncpa [#allocation6], 0 }
   0x2   :  { %10 = vsyncpa [#allocation4], 0  ;;  %s16_s14 = sshll.u32 %s210_s0, 4  ;;  %s175_s15 = smov [#allocation2]   ;;  %s17_s14 = int_to_ptr.hbm [resolvable:$true] %s16_s14 }
   0x3   :  { %s18_s16 = sshll.u32 %s175_s15, 4  ;;  %s27_s19 = sshll.u32 %s211_s1, 4  ;;  %s19_s16 = int_to_ptr.vmem [resolvable:$true] %s18_s16  ;;  %s28_s19 = int_to_ptr.hbm [resolvable:$true] %s27_s19 }
   0x4   :  { %21 = dma.hbm_to_vmem [thread:$0]  %s17_s14, 128, %s19_s16, [#allocation3]  }
   0x5   :  { %s176_s20 = smov [#allocation5]  }
   0x6   :  { %s29_s21 = sshll.u32 %s176_s20, 4  ;;  %s30_s21 = int_to_ptr.vmem [resolvable:$true] %s29_s21 }
   0x7   :  { %32 = dma.hbm_to_vmem [thread:$0]  %s28_s19, 128, %s30_s21, [#allocation6]  }
   0x8   :  { %169 = dma.done.wait [#allocation3], 128  }
   0x9   :  { %170 = vsyncadd [#allocation3], 4294967168 }
   0xa   :  { %171 = dma.done.wait [#allocation6], 128  }
   0xb   :  { %172 = vsyncadd [#allocation6], 4294967168  ;;  %vm49_vm0 = vcmask 64512   ;;  %v44_v0 = vld [vmem:[#allocation5] sm:$0xff]  ;;  %v43_v1 = vld [vmem:[#allocation2] sm:$0xff]  ;;  %s177_s1 = smov [#allocation7]  }
   0xc   :  { %68 = vmatpush.msra.mxu0 %v44_v0  ;;  %v96_v2 = vld [vmem:[%s212_s2] ss:$0 sm:$0xff]  ;;  %s79_s23 = sshll.u32 %s177_s1, 4  ;;  %s81_s26 = sshll.u32 %s213_s3, 4  ;;  %s80_s23 = int_to_ptr.vmem [resolvable:$true] %s79_s23  ;;  %s82_s26 = int_to_ptr.hbm [resolvable:$true] %s81_s26 }
   0xd   :  { %92 = vmatmul.msk.f32.vlgmr.msra.gmra.mxu0 %vm49_vm0, %v43_v1 }
  0x8a   :  { %v70_v3 = vpop.f32.mrf.mxu0 }
  0x8b   :  { %v71_v4 = vadd.f32 %v96_v2, %v70_v3 }
  0x8d   :  { %73 = vst.msk [vmem:[#allocation7] sm:$0xff] %vm49_vm0, %v71_v4 }
  0x8e   :  { %84 = dma.vmem_to_hbm [thread:$0]  %s80_s23, 128, %s82_s26, [#allocation4]  }
  0x8f   :  { %173 = dma.done.wait [#allocation4], 128  }
  0x90   :  { %174 = vsyncadd [#allocation4], 4294967168 }
  0x91   :  { %89 = vsyncpa [#allocation3], 1 }
  0x92   :  { %90 = vsyncpa [#allocation6], 1 }
  0x93   :  { %91 = vsyncpa [#allocation4], 1 }

</bundles_post_ra>
